<compile_context>
chip_gen: v5e
topology: v5e:2x2
jax: 0.10.0
libtpu: 0.0.40
codegen_flags: <defaults>
</compile_context>

<pallas_src>
import jax
import jax.numpy as jnp
from jax.experimental import pallas as pl
from jax.experimental.pallas import tpu as pltpu


# ----------------------------------------------------------------------------
# small helpers
# ----------------------------------------------------------------------------

def _images_per_step(n, h):
    """Largest divisor of n such that B*H <= 256 (fills MXU rows, bounded block)."""
    target = max(1, 256 // max(h, 1))
    best = 1
    for cand in range(1, n + 1):
        if n % cand == 0 and cand <= target:
            best = cand
    return best


def _const_spec(block_shape, index_map):
    """BlockSpec for a grid-constant operand; single-buffered when supported."""
    try:
        return pl.BlockSpec(block_shape, index_map, pipeline_mode=pl.Buffered(1))
    except (AttributeError, TypeError, ValueError):
        return pl.BlockSpec(block_shape, index_map)


def _vmem_limit(*buf_bytes):
    """Explicit scoped-VMEM limit: required bytes + 50% margin, clamped to
    [32 MiB, 64 MiB] so it is above the default on every chip and never above
    v7x's 64 MiB physical VMEM."""
    need = int(sum(int(b) for b in buf_bytes))
    return int(min(64 << 20, max(32 << 20, need + need // 2 + (2 << 20))))


# ----------------------------------------------------------------------------
# Kernels
# ----------------------------------------------------------------------------

def _deconv_kernel(x_ref, g_ref, o_ref):
    """ConvTranspose2d(C, C, 4, stride=2, padding=1, bias=False) for B images.

    x_ref : (B, H, W*C)      channels packed on lanes: column index = ix*C + cin
    g_ref : (4, W*C, 2*W*C)  per-kernel-row tap matrices G_ky (zero blocks removed)
    o_ref : (B, H, 4*W*C)    lanes = [even-row half | odd-row half], each (ox*C+cout)

    even output row  oy = 2m   :  x[m] @ G_1 + x[m-1] @ G_3
    odd  output row  oy = 2m+1 :  x[m] @ G_2 + x[m+1] @ G_0
    The +-1 row halo is handled with shifted row-range stores (no host padding).
    """
    B, H, WC = x_ref.shape
    WC2 = g_ref.shape[2]                       # 2*W*C
    x = x_ref[...].reshape(B * H, WC)

    def dot_tap(k):
        return jnp.dot(x, g_ref[k],
                       preferred_element_type=jnp.float32).reshape(B, H, WC2)

    d0 = dot_tap(0)                            # -> odd row  m = iy - 1
    d1 = dot_tap(1)                            # -> even row m = iy
    d2 = dot_tap(2)                            # -> odd row  m = iy
    d3 = dot_tap(3)                            # -> even row m = iy + 1
    dt = o_ref.dtype

    # even-parity output rows (first lane half)
    o_ref[:, 0:1, 0:WC2] = d1[:, 0:1, :].astype(dt)
    o_ref[:, 1:H, 0:WC2] = (d1[:, 1:H, :] + d3[:, 0:H - 1, :]).astype(dt)
    # odd-parity output rows (second lane half)
    o_ref[:, H - 1:H, WC2:2 * WC2] = d2[:, H - 1:H, :].astype(dt)
    o_ref[:, 0:H - 1, WC2:2 * WC2] = (d2[:, 0:H - 1, :] + d0[:, 1:H, :]).astype(dt)


def _bilinear_kernel(x_ref, mw_ref, rh_ref, o_ref):
    """Bilinear x2 upsample (align_corners=True) for B images.

    x_ref : (B, H, W*C)    channels packed on lanes
    mw_ref: (W*C, 2W*C)    kron(Rw^T, I_C): column interpolation on packed lanes
    rh_ref: (2H, H)        row interpolation matrix
    o_ref : (B, 2H, 2W*C)
    """
    B, H, WC = x_ref.shape
    WC2 = mw_ref.shape[1]
    # columns first (cheaper when W*C > H), then rows
    u = jnp.dot(x_ref[...].reshape(B * H, WC), mw_ref[...],
                preferred_element_type=jnp.float32).reshape(B, H, WC2)
    rh = rh_ref[...]
    for b in range(B):                         # B is a static Python int
        o_ref[b] = jnp.dot(rh, u[b],
                           preferred_element_type=jnp.float32).astype(o_ref.dtype)


# ----------------------------------------------------------------------------
# Host-side weight folding
# ----------------------------------------------------------------------------

def _deconv_tap_matrices(w, W):
    """Fold the PyTorch (Cin, Cout, 4, 4) ConvTranspose2d weight into 4 per-row
    tap matrices, stacked as (4, W*C, 2*W*C).

    G_ky[(ix*C + cin), (ox*C + cout)] = w[cin, cout, ky, kx] with
    kx = ox + 1 - 2*ix (out-of-range taps zeroed)."""
    # TODO(synk): for large W, replace this dense column fold (O(W^2*C^2) weight
    # floats) with per-(ky,kx) CxC matmuls / roll-based column taps.
    C = w.shape[0]
    ix = jnp.arange(W)
    ox = jnp.arange(2 * W)
    kx = ox[None, :] + 1 - 2 * ix[:, None]                 # (W, 2W)
    valid = (kx >= 0) & (kx < 4)
    kxc = jnp.clip(kx, 0, 3)

    def tap(ky):
        wk = w[:, :, ky, :]                                # (Cin, Cout, 4)
        g = wk[:, :, kxc]                                  # (Cin, Cout, W, 2W)
        g = jnp.where(valid[None, None], g, 0.0)
        g = jnp.transpose(g, (2, 0, 3, 1))                 # (W, Cin, 2W, Cout)
        return g.reshape(W * C, 2 * W * C)

    return jnp.stack([tap(0), tap(1), tap(2), tap(3)], axis=0).astype(jnp.float32)


def _interp_matrix(n_in, n_out):
    """align_corners=True linear-interpolation matrix of shape (n_out, n_in)."""
    s = jnp.arange(n_out, dtype=jnp.float32) * (n_in - 1) / (n_out - 1)
    i0 = jnp.clip(jnp.floor(s).astype(jnp.int32), 0, n_in - 2)
    f = s - i0.astype(jnp.float32)
    return (jax.nn.one_hot(i0, n_in, dtype=jnp.float32) * (1.0 - f)[:, None]
            + jax.nn.one_hot(i0 + 1, n_in, dtype=jnp.float32) * f[:, None])


# ----------------------------------------------------------------------------
# Wrappers (NCHW in / NCHW out, like the PyTorch module)
# ----------------------------------------------------------------------------

def deconv_upsample(x_nchw, weight):
    """if_deconv=True branch. weight: (C, C, 4, 4) PyTorch ConvTranspose2d layout."""
    N, C, H, W = x_nchw.shape
    WC = W * C
    B = _images_per_step(N, H)
    xp = jnp.transpose(x_nchw, (0, 2, 3, 1)).reshape(N, H, WC).astype(jnp.float32)
    g = _deconv_tap_matrices(weight.astype(jnp.float32), W)   # (4, WC, 2*WC)

    x_bytes = B * H * WC * 4
    o_bytes = B * H * 4 * WC * 4
    g_bytes = 4 * WC * 2 * WC * 4

    out = pl.pallas_call(
        _deconv_kernel,
        out_shape=jax.ShapeDtypeStruct((N, H, 4 * WC), jnp.float32),
        grid=(N // B,),
        in_specs=[
            pl.BlockSpec((B, H, WC), lambda n: (n, 0, 0)),
            _const_spec((4, WC, 2 * WC), lambda n: (0, 0, 0)),
        ],
        out_specs=pl.BlockSpec((B, H, 4 * WC), lambda n: (n, 0, 0)),
        compiler_params=pltpu.CompilerParams(
            dimension_semantics=("parallel",),
            vmem_limit_bytes=_vmem_limit(2 * x_bytes, 2 * o_bytes, 2 * g_bytes)),
    )(xp, g)

    # (N, H, [parity, out_col, out_chan]) -> (N, C, 2H, 2W)
    out = out.reshape(N, H, 2, 2 * W, C)
    return jnp.transpose(out, (0, 4, 1, 2, 3)).reshape(N, C, 2 * H, 2 * W)


def bilinear_upsample(x_nchw):
    """if_deconv=False branch: nn.Upsample(scale_factor=2, bilinear, align_corners=True)."""
    N, C, H, W = x_nchw.shape
    WC = W * C
    B = _images_per_step(N, H)
    xr = jnp.transpose(x_nchw, (0, 2, 3, 1)).reshape(N, H, WC).astype(jnp.float32)
    rh = _interp_matrix(H, 2 * H)                              # (2H, H)
    rw = _interp_matrix(W, 2 * W)                              # (2W, W)
    mw = jnp.kron(rw.T, jnp.eye(C, dtype=jnp.float32))         # (W*C, 2W*C)

    x_bytes = B * H * WC * 4
    o_bytes = B * 2 * H * 2 * WC * 4
    w_bytes = WC * 2 * WC * 4 + 2 * H * H * 4

    out = pl.pallas_call(
        _bilinear_kernel,
        out_shape=jax.ShapeDtypeStruct((N, 2 * H, 2 * WC), jnp.float32),
        grid=(N // B,),
        in_specs=[
            pl.BlockSpec((B, H, WC), lambda n: (n, 0, 0)),
            _const_spec((WC, 2 * WC), lambda n: (0, 0)),
            _const_spec((2 * H, H), lambda n: (0, 0)),
        ],
        out_specs=pl.BlockSpec((B, 2 * H, 2 * WC), lambda n: (n, 0, 0)),
        compiler_params=pltpu.CompilerParams(
            dimension_semantics=("parallel",),
            vmem_limit_bytes=_vmem_limit(2 * x_bytes, 2 * o_bytes, 2 * w_bytes)),
    )(xr, mw, rh)

    out = out.reshape(N, 2 * H, 2 * W, C)
    return jnp.transpose(out, (0, 3, 1, 2))


def upsample_forward(x, weight=None, if_deconv=True):
    """Forward pass of the PyTorch `upsample` module."""
    if if_deconv:
        return deconv_upsample(x, weight)
    return bilinear_upsample(x)


# ----------------------------------------------------------------------------
# Pure-JAX references
# ----------------------------------------------------------------------------

def ref_deconv(x, w):
    """ConvTranspose2d(C, C, 4, stride=2, padding=1, bias=False) via dilated conv."""
    w_oihw = jnp.transpose(w[:, :, ::-1, ::-1], (1, 0, 2, 3))
    return jax.lax.conv_general_dilated(
        x, w_oihw, window_strides=(1, 1), padding=((2, 2), (2, 2)),
        lhs_dilation=(2, 2), dimension_numbers=("NCHW", "OIHW", "NCHW"))


def ref_bilinear(x):
    """Bilinear x2 upsample, align_corners=True (gather formulation)."""
    N, C, H, W = x.shape
    Ho, Wo = 2 * H, 2 * W
    sy = jnp.arange(Ho, dtype=jnp.float32) * (H - 1) / (Ho - 1)
    sx = jnp.arange(Wo, dtype=jnp.float32) * (W - 1) / (Wo - 1)
    y0 = jnp.clip(jnp.floor(sy).astype(jnp.int32), 0, H - 2)
    x0 = jnp.clip(jnp.floor(sx).astype(jnp.int32), 0, W - 2)
    fy = (sy - y0.astype(jnp.float32))[None, None, :, None]
    fx = (sx - x0.astype(jnp.float32))[None, None, None, :]
    top = x[:, :, y0, :] * (1 - fy) + x[:, :, y0 + 1, :] * fy
    return top[:, :, :, x0] * (1 - fx) + top[:, :, :, x0 + 1] * fx


if __name__ == "__main__":
    N, C, H, W = 2, 4, 16, 16
    key = jax.random.PRNGKey(0)
    k_x, k_w = jax.random.split(key)
    x = jax.random.normal(k_x, (N, C, H, W), jnp.float32)
    # PyTorch ConvTranspose2d weight layout: (in_channels, out_channels, kH, kW)
    w = 0.1 * jax.random.normal(k_w, (C, C, 4, 4), jnp.float32)

    # if_deconv=True branch
    out_d = jax.block_until_ready(upsample_forward(x, weight=w, if_deconv=True))
    ref_d = jax.block_until_ready(ref_deconv(x, w))
    assert out_d.shape == (N, C, 2 * H, 2 * W), out_d.shape
    err_d = float(jnp.max(jnp.abs(out_d - ref_d)))
    assert err_d < 1e-4, err_d

    # if_deconv=False branch
    out_b = jax.block_until_ready(upsample_forward(x, if_deconv=False))
    ref_b = jax.block_until_ready(ref_bilinear(x))
    assert out_b.shape == (N, C, 2 * H, 2 * W), out_b.shape
    err_b = float(jnp.max(jnp.abs(out_b - ref_b)))
    assert err_b < 1e-4, err_b

    print("KERNEL_OK")
</pallas_src>

<mosaic_0001>
module attributes {stable_mosaic.version = 11 : i64} {
  func.func @_deconv_kernel(%arg0: i32, %arg1: memref<2x16x64xf32, #tpu.memory_space<vmem>>, %arg2: memref<4x64x128xf32, #tpu.memory_space<vmem>>, %arg3: memref<2x16x256xf32, #tpu.memory_space<vmem>>) attributes {dimension_semantics = [#tpu.dimension_semantics<parallel>], iteration_bounds = array<i64: 1>, scalar_prefetch = 0 : i64, scratch_operands = 0 : i64, tpu.core_type = #tpu.core_type<tc>, window_params = [{transform_indices = @transform_0, window_bounds = array<i64: 2, 16, 64>}, {pipeline_mode = #tpu.pipeline_mode<synchronous>, transform_indices = @transform_1, window_bounds = array<i64: 4, 64, 128>}, {transform_indices = @transform_2, window_bounds = array<i64: 2, 16, 256>}]} {
    %c0 = arith.constant 0 : index
    %c0_0 = arith.constant 0 : index
    %c0_1 = arith.constant 0 : index
    %0 = vector.load %arg1[%c0, %c0_0, %c0_1] : memref<2x16x64xf32, #tpu.memory_space<vmem>>, vector<2x16x64xf32>
    %1 = vector.shape_cast %0 : vector<2x16x64xf32> to vector<32x64xf32>
    %c0_2 = arith.constant 0 : index
    %c0_3 = arith.constant 0 : index
    %c0_4 = arith.constant 0 : index
    %2 = vector.load %arg2[%c0_2, %c0_3, %c0_4] : memref<4x64x128xf32, #tpu.memory_space<vmem>>, vector<1x64x128xf32>
    %3 = vector.shape_cast %2 : vector<1x64x128xf32> to vector<64x128xf32>
    %cst = arith.constant dense<0.000000e+00> : vector<32x128xf32>
    %4 = tpu.matmul %1, %3, %cst {dimension_numbers = #tpu.dot_dimension_numbers<[1], [0], [0], [1], [0, 0, 1, 1], [], []>} : vector<32x64xf32>, vector<64x128xf32>, vector<32x128xf32> -> vector<32x128xf32>
    %5 = vector.shape_cast %4 : vector<32x128xf32> to vector<2x16x128xf32>
    %c1 = arith.constant 1 : index
    %c0_5 = arith.constant 0 : index
    %c0_6 = arith.constant 0 : index
    %6 = vector.load %arg2[%c1, %c0_5, %c0_6] : memref<4x64x128xf32, #tpu.memory_space<vmem>>, vector<1x64x128xf32>
    %7 = vector.shape_cast %6 : vector<1x64x128xf32> to vector<64x128xf32>
    %cst_7 = arith.constant dense<0.000000e+00> : vector<32x128xf32>
    %8 = tpu.matmul %1, %7, %cst_7 {dimension_numbers = #tpu.dot_dimension_numbers<[1], [0], [0], [1], [0, 0, 1, 1], [], []>} : vector<32x64xf32>, vector<64x128xf32>, vector<32x128xf32> -> vector<32x128xf32>
    %9 = vector.shape_cast %8 : vector<32x128xf32> to vector<2x16x128xf32>
    %c2 = arith.constant 2 : index
    %c0_8 = arith.constant 0 : index
    %c0_9 = arith.constant 0 : index
    %10 = vector.load %arg2[%c2, %c0_8, %c0_9] : memref<4x64x128xf32, #tpu.memory_space<vmem>>, vector<1x64x128xf32>
    %11 = vector.shape_cast %10 : vector<1x64x128xf32> to vector<64x128xf32>
    %cst_10 = arith.constant dense<0.000000e+00> : vector<32x128xf32>
    %12 = tpu.matmul %1, %11, %cst_10 {dimension_numbers = #tpu.dot_dimension_numbers<[1], [0], [0], [1], [0, 0, 1, 1], [], []>} : vector<32x64xf32>, vector<64x128xf32>, vector<32x128xf32> -> vector<32x128xf32>
    %13 = vector.shape_cast %12 : vector<32x128xf32> to vector<2x16x128xf32>
    %c3 = arith.constant 3 : index
    %c0_11 = arith.constant 0 : index
    %c0_12 = arith.constant 0 : index
    %14 = vector.load %arg2[%c3, %c0_11, %c0_12] : memref<4x64x128xf32, #tpu.memory_space<vmem>>, vector<1x64x128xf32>
    %15 = vector.shape_cast %14 : vector<1x64x128xf32> to vector<64x128xf32>
    %cst_13 = arith.constant dense<0.000000e+00> : vector<32x128xf32>
    %16 = tpu.matmul %1, %15, %cst_13 {dimension_numbers = #tpu.dot_dimension_numbers<[1], [0], [0], [1], [0, 0, 1, 1], [], []>} : vector<32x64xf32>, vector<64x128xf32>, vector<32x128xf32> -> vector<32x128xf32>
    %17 = vector.shape_cast %16 : vector<32x128xf32> to vector<2x16x128xf32>
    %18 = vector.extract_strided_slice %9 {offsets = [0, 0, 0], sizes = [2, 1, 128], strides = [1, 1, 1]} : vector<2x16x128xf32> to vector<2x1x128xf32>
    %c0_14 = arith.constant 0 : index
    %c0_15 = arith.constant 0 : index
    %c0_16 = arith.constant 0 : index
    %19 = vector.load %arg3[%c0_14, %c0_15, %c0_16] : memref<2x16x256xf32, #tpu.memory_space<vmem>>, vector<2x1x128xf32>
    tpu.vector_store %arg3[%c0_14, %c0_15, %c0_16], %18 {strides = array<i32>} : memref<2x16x256xf32, #tpu.memory_space<vmem>>, vector<2x1x128xf32>,
    %20 = vector.extract_strided_slice %9 {offsets = [0, 1, 0], sizes = [2, 15, 128], strides = [1, 1, 1]} : vector<2x16x128xf32> to vector<2x15x128xf32>
    %21 = vector.extract_strided_slice %17 {offsets = [0, 0, 0], sizes = [2, 15, 128], strides = [1, 1, 1]} : vector<2x16x128xf32> to vector<2x15x128xf32>
    %22 = arith.addf %20, %21 : vector<2x15x128xf32>
    %c0_17 = arith.constant 0 : index
    %c1_18 = arith.constant 1 : index
    %c0_19 = arith.constant 0 : index
    %23 = vector.load %arg3[%c0_17, %c1_18, %c0_19] : memref<2x16x256xf32, #tpu.memory_space<vmem>>, vector<2x15x128xf32>
    tpu.vector_store %arg3[%c0_17, %c1_18, %c0_19], %22 {strides = array<i32>} : memref<2x16x256xf32, #tpu.memory_space<vmem>>, vector<2x15x128xf32>,
    %24 = vector.extract_strided_slice %13 {offsets = [0, 15, 0], sizes = [2, 1, 128], strides = [1, 1, 1]} : vector<2x16x128xf32> to vector<2x1x128xf32>
    %c0_20 = arith.constant 0 : index
    %c15 = arith.constant 15 : index
    %c128 = arith.constant 128 : index
    %25 = vector.load %arg3[%c0_20, %c15, %c128] : memref<2x16x256xf32, #tpu.memory_space<vmem>>, vector<2x1x128xf32>
    tpu.vector_store %arg3[%c0_20, %c15, %c128], %24 {strides = array<i32>} : memref<2x16x256xf32, #tpu.memory_space<vmem>>, vector<2x1x128xf32>,
    %26 = vector.extract_strided_slice %13 {offsets = [0, 0, 0], sizes = [2, 15, 128], strides = [1, 1, 1]} : vector<2x16x128xf32> to vector<2x15x128xf32>
    %27 = vector.extract_strided_slice %5 {offsets = [0, 1, 0], sizes = [2, 15, 128], strides = [1, 1, 1]} : vector<2x16x128xf32> to vector<2x15x128xf32>
    %28 = arith.addf %26, %27 : vector<2x15x128xf32>
    %c0_21 = arith.constant 0 : index
    %c0_22 = arith.constant 0 : index
    %c128_23 = arith.constant 128 : index
    %29 = vector.load %arg3[%c0_21, %c0_22, %c128_23] : memref<2x16x256xf32, #tpu.memory_space<vmem>>, vector<2x15x128xf32>
    tpu.vector_store %arg3[%c0_21, %c0_22, %c128_23], %28 {strides = array<i32>} : memref<2x16x256xf32, #tpu.memory_space<vmem>>, vector<2x15x128xf32>,
    return
  }
  func.func @transform_0(%arg0: i32) -> (i32, i32, i32) {
    %c0_i32 = arith.constant 0 : i32
    %c0_i32_0 = arith.constant 0 : i32
    %c0_i32_1 = arith.constant 0 : i32
    return %arg0, %c0_i32, %c0_i32_0 : i32, i32, i32
  }
  func.func @transform_1(%arg0: i32) -> (i32, i32, i32) {
    %c0_i32 = arith.constant 0 : i32
    %c0_i32_0 = arith.constant 0 : i32
    %c0_i32_1 = arith.constant 0 : i32
    %c0_i32_2 = arith.constant 0 : i32
    return %c0_i32, %c0_i32_0, %c0_i32_1 : i32, i32, i32
  }
  func.func @transform_2(%arg0: i32) -> (i32, i32, i32) {
    %c0_i32 = arith.constant 0 : i32
    %c0_i32_0 = arith.constant 0 : i32
    %c0_i32_1 = arith.constant 0 : i32
    return %arg0, %c0_i32, %c0_i32_0 : i32, i32, i32
  }
}

</mosaic_0001>

<bundles_post_ra>
// kernel: tpu_custom_call.1
= control target key start
LH: loop header
LB: loop body
LE: loop exit
PB: predicated region body
PF: predicated region fallthrough
CT: control target
= control target key end

     0   :  { %7 = vsyncpa [#allocation3], 0  ;;  %s440_s0 = inlined_call_operand.hbm [shape: f32[2,16,64], index: 0, kind: input, shape index: {}]   ;;  %s441_s1 = inlined_call_operand.hbm [shape: f32[4,64,128], index: 1, kind: input, shape index: {}]   ;;  %s442_s2 = inlined_call_operand.hbm [shape: f32[2,16,256], index: 2, kind: output, shape index: {}]  }
   0x1   :  { %8 = vsyncpa [#allocation6], 0 }
   0x2   :  { %9 = vsyncpa [#allocation4], 0  ;;  %s14_s11 = sshll.u32 %s440_s0, 4  ;;  %s389_s12 = smov [#allocation2]   ;;  %s15_s11 = int_to_ptr.hbm [resolvable:$true] %s14_s11 }
   0x3   :  { %s16_s13 = sshll.u32 %s389_s12, 4  ;;  %s27_s16 = sshll.u32 %s441_s1, 4  ;;  %s17_s13 = int_to_ptr.vmem [resolvable:$true] %s16_s13  ;;  %s28_s16 = int_to_ptr.hbm [resolvable:$true] %s27_s16 }
   0x4   :  { %s390_s17 = smov 128   ;;  %s391_s18 = smov 8  }
   0x5   :  { %22 = dma.hbm_to_vmem [thread:$0]  %s15_s11, 512, %s17_s13, [#allocation3], %s390_s17, %s390_s17, %s391_s18  }
   0x6   :  { %s392_s19 = smov [#allocation5]  }
   0x7   :  { %s29_s20 = sshll.u32 %s392_s19, 4  ;;  %s30_s20 = int_to_ptr.vmem [resolvable:$true] %s29_s20 }
   0x8   :  { %35 = dma.hbm_to_vmem [thread:$0]  %s28_s16, 4096, %s30_s20, [#allocation6], %s390_s17, %s390_s17, %s391_s18  }
   0x9   :  { %383 = dma.done.wait [#allocation3], 512  }
   0xa   :  { %384 = vsyncadd [#allocation3], 4294966784 }
   0xb   :  { %385 = dma.done.wait [#allocation6], 4096  }
   0xc   :  { %386 = vsyncadd [#allocation6], 4294963200  ;;  %v55_v0 = vld [vmem:[#allocation5 + $0x38] sm:$0xff]  ;;  %v54_v2 = vld [vmem:[#allocation5 + $0x30] sm:$0xff]  ;;  %vm56_vm0 = vcmask 523264   ;;  %vm249_vm1 = vcmask 1046528  }
   0xd   :  { %v182_v1 = vld [vmem:[#allocation5 + $0xf8] sm:$0xff]  ;;  %77 = vmatpush.msra.mxu0 %v55_v0  ;;  %v181_v4 = vld [vmem:[#allocation5 + $0xf0] sm:$0xff]  ;;  %v53_v5 = vld [vmem:[#allocation5 + $0x28] sm:$0xff]  ;;  %vm218_vm2 = vcmask 1040384   ;;  %s393_s0 = smov [#allocation7]   ;;  %s274_s23 = sshll.u32 %s442_s2, 4  ;;  %s275_s23 = int_to_ptr.hbm [resolvable:$true] %s274_s23 }
   0xe   :  { %191 = vmatpush.msra.mxu3 %v182_v1  ;;  %v144_v3 = vld [vmem:[#allocation5 + $0xb8] sm:$0xff]  ;;  %v143_v6 = vld [vmem:[#allocation5 + $0xb0] sm:$0xff]  ;;  %v180_v7 = vld [vmem:[#allocation5 + $0xe8] sm:$0xff]  ;;  %s272_s1 = sshll.u32 %s393_s0, 4  ;;  %s394_s24 = smov 256   ;;  %s273_s1 = int_to_ptr.vmem [resolvable:$true] %s272_s1 }
   0xf   :  { %153 = vmatpush.msra.mxu2 %v144_v3  ;;  %78 = vmatpush.msra.mxu0 %v54_v2  ;;  %v142_v8 = vld [vmem:[#allocation5 + $0xa8] sm:$0xff]  ;;  %v52_v9 = vld [vmem:[#allocation5 + $0x20] sm:$0xff]  ;;  %v106_v11 = vld [vmem:[#allocation5 + $0x78] sm:$0xff]  ;;  %s395_s25 = smov 16  }
  0x10   :  { %192 = vmatpush.msra.mxu3 %v181_v4  ;;  %v179_v10 = vld [vmem:[#allocation5 + $0xe0] sm:$0xff]  ;;  %v105_v13 = vld [vmem:[#allocation5 + $0x70] sm:$0xff]  ;;  %v51_v14 = vld [vmem:[#allocation5 + $0x18] sm:$0xff]  ;;  %115 = vmatpush.msra.mxu1 %v106_v11 }
  0x11   :  { %154 = vmatpush.msra.mxu2 %v143_v6  ;;  %79 = vmatpush.msra.mxu0 %v53_v5  ;;  %v141_v12 = vld [vmem:[#allocation5 + $0xa0] sm:$0xff]  ;;  %v178_v15 = vld [vmem:[#allocation5 + $0xd8] sm:$0xff]  ;;  %v104_v17 = vld [vmem:[#allocation5 + $0x68] sm:$0xff] }
  0x12   :  { %193 = vmatpush.msra.mxu3 %v180_v7  ;;  %v140_v16 = vld [vmem:[#allocation5 + $0x98] sm:$0xff]  ;;  %v50_v18 = vld [vmem:[#allocation5 + $0x10] sm:$0xff]  ;;  %116 = vmatpush.msra.mxu1 %v105_v13  ;;  %v103_v21 = vld [vmem:[#allocation5 + $0x60] sm:$0xff] }
  0x13   :  { %155 = vmatpush.msra.mxu2 %v142_v8  ;;  %80 = vmatpush.msra.mxu0 %v52_v9  ;;  %v177_v19 = vld [vmem:[#allocation5 + $0xd0] sm:$0xff]  ;;  %v49_v22 = vld [vmem:[#allocation5 + $0x8] sm:$0xff]  ;;  %v102_v25 = vld [vmem:[#allocation5 + $0x58] sm:$0xff] }
  0x14   :  { %194 = vmatpush.msra.mxu3 %v179_v10  ;;  %v139_v20 = vld [vmem:[#allocation5 + $0x90] sm:$0xff]  ;;  %117 = vmatpush.msra.mxu1 %v104_v17  ;;  %v176_v23 = vld [vmem:[#allocation5 + $0xc8] sm:$0xff]  ;;  %v48_v26 = vld [vmem:[#allocation5] sm:$0xff] }
  0x15   :  { %156 = vmatpush.msra.mxu2 %v141_v12  ;;  %81 = vmatpush.msra.mxu0 %v51_v14  ;;  %v138_v24 = vld [vmem:[#allocation5 + $0x88] sm:$0xff]  ;;  %v175_v27 = vld [vmem:[#allocation5 + $0xc0] sm:$0xff]  ;;  %v101_v30 = vld [vmem:[#allocation5 + $0x50] sm:$0xff] }
  0x16   :  { %195 = vmatpush.msra.mxu3 %v178_v15  ;;  %118 = vmatpush.msra.mxu1 %v103_v21  ;;  %v44_v28 = vld [vmem:[#allocation2] sm:$0xff]  ;;  %v100_v31 = vld [vmem:[#allocation5 + $0x48] sm:$0xff]  ;;  %v46_v34 = vld [vmem:[#allocation2 + $0x10] sm:$0xff] }
  0x17   :  { %157 = vmatpush.msra.mxu2 %v140_v16  ;;  %82 = vmatpush.msra.mxu0 %v50_v18  ;;  %v137_v29 = vld [vmem:[#allocation5 + $0x80] sm:$0xff]  ;;  %v45_v33 = vld [vmem:[#allocation2 + $0x8] sm:$0xff]  ;;  %v47_v35 = vld [vmem:[#allocation2 + $0x18] sm:$0xff] }
  0x18   :  { %196 = vmatpush.msra.mxu3 %v177_v19  ;;  %119 = vmatpush.msra.mxu1 %v102_v25  ;;  %v99_v32 = vld [vmem:[#allocation5 + $0x40] sm:$0xff] }
  0x19   :  { %158 = vmatpush.msra.mxu2 %v139_v20  ;;  %83 = vmatpush.msra.mxu0 %v49_v22 }
  0x1a   :  { %197 = vmatpush.msra.mxu3 %v176_v23  ;;  %120 = vmatpush.msra.mxu1 %v101_v30 }
  0x1b   :  { %159 = vmatpush.msra.mxu2 %v138_v24  ;;  %84 = vmatpush.msra.mxu0 %v48_v26 }
  0x1c   :  { %198 = vmatpush.msra.mxu3 %v175_v27  ;;  %288 = vmatmul.msk.f32.vlgmr.msra.gmra.mxu0 %vm56_vm0, %v44_v28 }
  0x1d   :  { %300 = vmatmul.msk.f32.vlgmr.msra.gmra.mxu3 %vm56_vm0, %v44_v28  ;;  %160 = vmatpush.msra.mxu2 %v137_v29 }
  0x1e   :  { %296 = vmatmul.msk.f32.vlgmr.msra.gmra.mxu2 %vm56_vm0, %v44_v28  ;;  %121 = vmatpush.msra.mxu1 %v100_v31 }
  0x20   :  { %122 = vmatpush.msra.mxu1 %v99_v32 }
  0x21   :  { %292 = vmatmul.msk.f32.vlgmr.msra.gmra.mxu1 %vm56_vm0, %v44_v28 }
  0x24   :  { %289 = vmatmul.msk.f32.gmra.mxu0 %vm56_vm0, %v45_v33 }
  0x25   :  { %301 = vmatmul.msk.f32.gmra.mxu3 %vm56_vm0, %v45_v33 }
  0x26   :  { %297 = vmatmul.msk.f32.gmra.mxu2 %vm56_vm0, %v45_v33 }
  0x29   :  { %293 = vmatmul.msk.f32.gmra.mxu1 %vm56_vm0, %v45_v33 }
  0x2c   :  { %290 = vmatmul.msk.f32.gmra.mxu0 %vm56_vm0, %v46_v34 }
  0x2d   :  { %302 = vmatmul.msk.f32.gmra.mxu3 %vm56_vm0, %v46_v34 }
  0x2e   :  { %298 = vmatmul.msk.f32.gmra.mxu2 %vm56_vm0, %v46_v34 }
  0x31   :  { %294 = vmatmul.msk.f32.gmra.mxu1 %vm56_vm0, %v46_v34 }
  0x34   :  { %291 = vmatmul.msk.f32.gmra.mxu0 %vm56_vm0, %v47_v35 }
  0x35   :  { %303 = vmatmul.msk.f32.gmra.mxu3 %vm56_vm0, %v47_v35 }
  0x36   :  { %299 = vmatmul.msk.f32.gmra.mxu2 %vm56_vm0, %v47_v35 }
  0x39   :  { %295 = vmatmul.msk.f32.gmra.mxu1 %vm56_vm0, %v47_v35 }
  0x99   :  { %v86_v36 = vpop.f32.mrf.mxu0 }
  0x9a   :  { %v250_v42 = vrot.slane %v86_v36, 1 }
  0x9e   :  { %v124_v38 = vpop.f32.mrf.mxu1 }
  0x9f   :  { %212 = vst [vmem:[#allocation7] sm:$0x1] %v124_v38 }
  0xa0   :  { %v200_v37 = vpop.f32.mrf.mxu3 }
  0xa1   :  { %v219_v39 = vrot.slane %v200_v37, 7  ;;  %v89_v40 = vpop.f32.mrf.mxu0  ;;  %v162_v41 = vpop.f32.mrf.mxu2 }
  0xa2   :  { %v251_v43 = vrot.slane %v89_v40, 1 }
  0xa3   :  { %v229_v44 = vadd.f32 %v219_v39, %v124_v38 }
  0xa4   :  { %v252_v45 = vsel %vm249_vm1, %v250_v42, %v251_v43 }
  0xa5   :  { %233 = vst [vmem:[#allocation7] sm:$0xfe] %v229_v44  ;;  %v260_v46 = vadd.f32 %v252_v45, %v162_v41 }
  0xa6   :  { %v127_v48 = vpop.f32.mrf.mxu1 }
  0xa7   :  { %264 = vst [vmem:[#allocation7 + $0x8] sm:$0xff] %v260_v46 }
  0xa8   :  { %v203_v47 = vpop.f32.mrf.mxu3 }
  0xa9   :  { %v220_v49 = vrot.slane %v203_v47, 7  ;;  %v92_v50 = vpop.f32.mrf.mxu0  ;;  %v165_v51 = vpop.f32.mrf.mxu2 }
  0xaa   :  { %v239_v53 = vrot.slane %v165_v51, 7  ;;  %v261_v54 = vadd.f32 %v251_v43, %v165_v51  ;;  %v253_v61 = vrot.slane %v92_v50, 1 }
  0xab   :  { %v221_v52 = vsel %vm218_vm2, %v219_v39, %v220_v49 }
  0xac   :  { %v230_v55 = vadd.f32 %v221_v52, %v127_v48  ;;  %243 = vst [vmem:[#allocation7 + $0x1f] sm:$0x1] %v239_v53 }
  0xad   :  { %265 = vst [vmem:[#allocation7 + $0x18] sm:$0x7f] %v261_v54 }
  0xae   :  { %234 = vst [vmem:[#allocation7 + $0x10] sm:$0xff] %v230_v55  ;;  %v130_v57 = vpop.f32.mrf.mxu1 }
  0xaf   :  { %213 = vst [vmem:[#allocation7 + $0x20] sm:$0x1] %v130_v57 }
  0xb0   :  { %v206_v56 = vpop.f32.mrf.mxu3 }
  0xb1   :  { %v222_v58 = vrot.slane %v206_v56, 7  ;;  %v95_v59 = vpop.f32.mrf.mxu0  ;;  %v168_v60 = vpop.f32.mrf.mxu2 }
  0xb2   :  { %v254_v62 = vrot.slane %v95_v59, 1 }
  0xb3   :  { %v231_v63 = vadd.f32 %v222_v58, %v130_v57 }
  0xb4   :  { %v255_v0 = vsel %vm249_vm1, %v253_v61, %v254_v62 }
  0xb5   :  { %235 = vst [vmem:[#allocation7 + $0x20] sm:$0xfe] %v231_v63  ;;  %v262_v1 = vadd.f32 %v255_v0, %v168_v60 }
  0xb6   :  { %v133_v4 = vpop.f32.mrf.mxu1 }
  0xb7   :  { %266 = vst [vmem:[#allocation7 + $0x28] sm:$0xff] %v262_v1 }
  0xb8   :  { %v209_v2 = vpop.f32.mrf.mxu3 }
  0xb9   :  { %v223_v3 = vrot.slane %v209_v2, 7  ;;  %v171_v5 = vpop.f32.mrf.mxu2 }
  0xba   :  { %v240_v6 = vrot.slane %v171_v5, 7  ;;  %v263_v7 = vadd.f32 %v254_v62, %v171_v5 }
  0xbb   :  { %v224_v8 = vsel %vm218_vm2, %v222_v58, %v223_v3 }
  0xbc   :  { %v232_v9 = vadd.f32 %v224_v8, %v133_v4  ;;  %244 = vst [vmem:[#allocation7 + $0x3f] sm:$0x1] %v240_v6 }
  0xbd   :  { %267 = vst [vmem:[#allocation7 + $0x38] sm:$0x7f] %v263_v7 }
  0xbe   :  { %236 = vst [vmem:[#allocation7 + $0x30] sm:$0xff] %v232_v9 }
  0xbf   :  { %280 = dma.vmem_to_hbm [thread:$0]  %s273_s1, 1024, %s275_s23, [#allocation4], %s394_s24, %s394_s24, %s395_s25  }
  0xc0   :  { %387 = dma.done.wait [#allocation4], 1024  }
  0xc1   :  { %388 = vsyncadd [#allocation4], 4294966272 }
  0xc2   :  { %285 = vsyncpa [#allocation3], 1 }
  0xc3   :  { %286 = vsyncpa [#allocation6], 1 }
  0xc4   :  { %287 = vsyncpa [#allocation4], 1 }

</bundles_post_ra>
